<compile_context>
chip_gen: v6e
topology: v6e:2x2x1
jax: 0.10.0
libtpu: 0.0.40
codegen_flags: <defaults>
</compile_context>

<pallas_src>
import jax
import jax.numpy as jnp
from jax.experimental import pallas as pl
from jax.experimental.pallas import tpu as pltpu


def _round_up(x, m):
    return (x + m - 1) // m * m


def _tpu_vmem_bytes():
    try:
        return int(pltpu.get_tpu_info().vmem_capacity_bytes)
    except Exception:
        return 64 * 2**20  # conservative fallback (v7x per-TensorCore VMEM)


_SQRT_HALF = 0.7071067811865476


def _ffn_kernel(x_ref, w1_ref, b1_ref, w2_ref, b2_ref, o_ref, acc_ref):
    # x_ref: (tm, Dp), w1_ref: (Dp, th), b1_ref: (1, th),
    # w2_ref: (th, Dp), b2_ref: (1, Dp), o_ref: (tm, Dp), acc_ref: (tm, Dp) f32
    h_idx = pl.program_id(1)

    @pl.when(h_idx == 0)
    def _init():
        acc_ref[...] = jnp.zeros_like(acc_ref)

    # First linear (H chunk): native-dtype MXU operands, f32 accumulation.
    pre = jnp.dot(x_ref[...], w1_ref[...], preferred_element_type=jnp.float32)
    pre = pre + b1_ref[...].astype(jnp.float32)
    # Exact (erf) GELU, matching torch.nn.GELU default, in f32.
    act = 0.5 * pre * (1.0 + jax.lax.erf(pre * jnp.float32(_SQRT_HALF)))
    # Second linear chunk: cast back to the weight dtype so bf16 models stay
    # on the bf16 MXU fast path (no-op for f32 weights); accumulate in f32.
    acc_ref[...] += jnp.dot(act.astype(w2_ref.dtype), w2_ref[...],
                            preferred_element_type=jnp.float32)

    @pl.when(h_idx == pl.num_programs(1) - 1)
    def _finalize():
        o_ref[...] = (acc_ref[...] + b2_ref[...].astype(jnp.float32)
                      ).astype(o_ref.dtype)


def prepare_ffn_params(w1, b1, w2, b2, *, x_dtype=None, th=None):
    """One-time weight padding + tiling plan.  Call once per parameter set and
    reuse across feed_forward_prepared calls (hoists the padding HBM traffic
    out of the hot path).  w1: (D, H), b1: (H,), w2: (H, D), b2: (D,)
    (nn.Linear weights stored transposed so the kernel computes x @ W)."""
    D, H = w1.shape
    assert w2.shape == (H, D) and b1.shape == (H,) and b2.shape == (D,)
    x_dt = jnp.dtype(x_dtype) if x_dtype is not None else jnp.dtype(w1.dtype)
    w_dt = jnp.dtype(w1.dtype)
    xb, wb = x_dt.itemsize, w_dt.itemsize

    phys = _tpu_vmem_bytes()
    budget = int(phys * 0.75)  # headroom for compiler temporaries

    # Generation-aware token tile: 512 on 128 MiB chips (v5e/v6e), 256 on
    # 64 MiB-per-core chips (v7x).  Clamped per call for small M.
    tm = 512 if phys >= 96 * 2**20 else 256

    Dp = _round_up(D, 128)
    Hp0 = _round_up(H, 128)

    def est(th_, nh_):
        wbufs = 1 if nh_ == 1 else 2  # resident weights: single buffer
        return (2 * tm * Dp * xb                          # x tile, 2-buffered
                + 2 * tm * Dp * xb                        # out tile, 2-buffered
                + wbufs * (Dp * th_ + th_ + th_ * Dp) * wb  # W1/b1/W2 chunks
                + Dp * wb                                 # b2 resident
                + tm * Dp * 4                             # f32 accumulator
                + tm * th_ * 4 + tm * Dp * 4)             # f32 intermediates

    if th is None:
        th = Hp0
        while th > 128 and est(th, pl.cdiv(Hp0, th)) > budget:
            th = _round_up(th // 2, 128)
    else:
        th = _round_up(min(th, Hp0), 128)
    Hp = _round_up(Hp0, th)
    nh = Hp // th

    vmem_limit = int(min(budget, max(32 * 2**20, int(est(th, nh) * 1.25))))

    w1_p = jnp.pad(w1, ((0, Dp - D), (0, Hp - H)))
    b1_p = jnp.pad(b1, ((0, Hp - H),)).reshape(1, Hp)
    w2_p = jnp.pad(w2, ((0, Hp - H), (0, Dp - D)))
    b2_p = jnp.pad(b2, ((0, Dp - D),)).reshape(1, Dp)

    return dict(w1=w1_p, b1=b1_p, w2=w2_p, b2=b2_p, D=D, H=H, Dp=Dp, Hp=Hp,
                th=th, nh=nh, tm=tm, w_dtype=w_dt, vmem_limit=vmem_limit)


def feed_forward_prepared(x, params, *, tm=None):
    """x: (..., D).  Returns same shape/dtype as x."""
    D, Dp, Hp, th, nh = (params[k] for k in ("D", "Dp", "Hp", "th", "nh"))
    orig_shape = x.shape
    assert orig_shape[-1] == D
    x2d = x.reshape(-1, D)
    M = x2d.shape[0]

    xb = jnp.dtype(x.dtype).itemsize
    floor = {4: 8, 2: 16, 1: 32}.get(xb, 8)  # dtype-aware sublane packing

    tm = tm if tm is not None else params["tm"]
    tm = max(floor, min(tm, _round_up(M, floor)))
    # Megacore (v7x = 2 TensorCores): keep >= 2 token tiles so the 'parallel'
    # M axis can be sharded across cores instead of leaving a grid of 1.
    while pl.cdiv(M, tm) < 2 and tm >= 2 * max(128, floor):
        tm //= 2
    tm = _round_up(tm, floor)
    nm = pl.cdiv(M, tm)  # no M padding: boundary block is clipped (exact)

    x_p = x2d if Dp == D else jnp.pad(x2d, ((0, 0), (0, Dp - D)))

    wb = params["w_dtype"].itemsize
    cost = pl.CostEstimate(
        flops=4 * M * Dp * Hp,
        transcendentals=M * Hp,
        bytes_accessed=2 * M * Dp * xb + (2 * Dp * Hp + Hp + Dp) * wb,
    )

    def w_spec(shape, imap):
        if nh == 1:  # resident for the whole grid: single buffer saves VMEM
            return pl.BlockSpec(shape, imap, pipeline_mode=pl.Buffered(1))
        return pl.BlockSpec(shape, imap)  # streamed: default double-buffering

    out_p = pl.pallas_call(
        _ffn_kernel,
        out_shape=jax.ShapeDtypeStruct((M, Dp), x.dtype),
        grid_spec=pltpu.PrefetchScalarGridSpec(
            num_scalar_prefetch=0,
            grid=(nm, nh),
            in_specs=[
                pl.BlockSpec((tm, Dp), lambda i, h: (i, 0)),   # x tile
                w_spec((Dp, th), lambda i, h: (0, h)),         # W1 H-chunk
                w_spec((1, th), lambda i, h: (0, h)),          # b1 H-chunk
                w_spec((th, Dp), lambda i, h: (h, 0)),         # W2 H-chunk
                pl.BlockSpec((1, Dp), lambda i, h: (0, 0),
                             pipeline_mode=pl.Buffered(1)),    # b2 resident
            ],
            out_specs=pl.BlockSpec((tm, Dp), lambda i, h: (i, 0)),
            scratch_shapes=[pltpu.VMEM((tm, Dp), jnp.float32)],
        ),
        compiler_params=pltpu.CompilerParams(
            dimension_semantics=("parallel", "arbitrary"),
            vmem_limit_bytes=params["vmem_limit"],
        ),
        cost_estimate=cost,
    )(x_p, params["w1"], params["b1"], params["w2"], params["b2"])

    out = out_p if Dp == D else out_p[:, :D]
    return out.reshape(orig_shape)


def feed_forward(x, w1, b1, w2, b2, *, tm=None):
    """Convenience one-shot wrapper.  For repeated calls with the same weights
    call prepare_ffn_params once and reuse it with feed_forward_prepared."""
    params = prepare_ffn_params(w1, b1, w2, b2, x_dtype=x.dtype)
    return feed_forward_prepared(x, params, tm=tm)


def _reference(x, w1, b1, w2, b2):
    h = jnp.dot(x.astype(jnp.float32), w1.astype(jnp.float32)) + b1.astype(jnp.float32)
    h = 0.5 * h * (1.0 + jax.lax.erf(h * jnp.float32(_SQRT_HALF)))
    y = jnp.dot(h, w2.astype(jnp.float32)) + b2.astype(jnp.float32)
    return y.astype(x.dtype)


if __name__ == "__main__":
    key = jax.random.PRNGKey(0)

    # Case 1: small swin-style shapes (batch=2, seq=8, input_dim=16, hidden=32),
    # single resident H chunk.
    B, N, D, H = 2, 8, 16, 32
    kx, kw1, kb1, kw2, kb2, k2 = jax.random.split(key, 6)
    x = jax.random.normal(kx, (B, N, D), dtype=jnp.float32)
    w1 = jax.random.normal(kw1, (D, H), dtype=jnp.float32) * 0.1
    b1 = jax.random.normal(kb1, (H,), dtype=jnp.float32) * 0.1
    w2 = jax.random.normal(kw2, (H, D), dtype=jnp.float32) * 0.1
    b2 = jax.random.normal(kb2, (D,), dtype=jnp.float32) * 0.1

    params = prepare_ffn_params(w1, b1, w2, b2, x_dtype=x.dtype)  # once, reused
    out = jax.block_until_ready(feed_forward_prepared(x, params))
    ref = _reference(x, w1, b1, w2, b2)
    assert out.shape == x.shape and out.dtype == x.dtype
    assert jnp.allclose(out, ref, atol=1e-4, rtol=1e-4), "case 1 mismatch"

    # Case 2: exercises the streamed-H reduction axis (th forced to 128) and a
    # token count that is not a tile multiple (clipped boundary block).
    B2, N2, D2, H2 = 2, 40, 24, 300
    ka, kb_, kc, kd, ke = jax.random.split(k2, 5)
    x2 = jax.random.normal(ka, (B2, N2, D2), dtype=jnp.float32)
    w1b = jax.random.normal(kb_, (D2, H2), dtype=jnp.float32) * 0.1
    b1b = jax.random.normal(kc, (H2,), dtype=jnp.float32) * 0.1
    w2b = jax.random.normal(kd, (H2, D2), dtype=jnp.float32) * 0.1
    b2b = jax.random.normal(ke, (D2,), dtype=jnp.float32) * 0.1
    params2 = prepare_ffn_params(w1b, b1b, w2b, b2b, x_dtype=x2.dtype, th=128)
    out2 = jax.block_until_ready(feed_forward_prepared(x2, params2, tm=32))
    ref2 = _reference(x2, w1b, b1b, w2b, b2b)
    assert out2.shape == x2.shape and out2.dtype == x2.dtype
    assert jnp.allclose(out2, ref2, atol=2e-4, rtol=2e-4), "case 2 mismatch"

    print("KERNEL_OK")
</pallas_src>

<mosaic_0001>
module attributes {stable_mosaic.version = 11 : i64} {
  func.func @_ffn_kernel(%arg0: i32, %arg1: i32, %arg2: memref<16x128xf32, #tpu.memory_space<vmem>>, %arg3: memref<128x128xf32, #tpu.memory_space<vmem>>, %arg4: memref<1x128xf32, #tpu.memory_space<vmem>>, %arg5: memref<128x128xf32, #tpu.memory_space<vmem>>, %arg6: memref<1x128xf32, #tpu.memory_space<vmem>>, %arg7: memref<16x128xf32, #tpu.memory_space<vmem>>, %arg8: memref<16x128xf32, #tpu.memory_space<vmem>>) attributes {dimension_semantics = [#tpu.dimension_semantics<parallel>, #tpu.dimension_semantics<arbitrary>], iteration_bounds = array<i64: 1, 1>, scalar_prefetch = 0 : i64, scratch_operands = 1 : i64, tpu.core_type = #tpu.core_type<tc>, window_params = [{transform_indices = @transform_0, window_bounds = array<i64: 16, 128>}, {pipeline_mode = #tpu.pipeline_mode<synchronous>, transform_indices = @transform_1, window_bounds = array<i64: 128, 128>}, {pipeline_mode = #tpu.pipeline_mode<synchronous>, transform_indices = @transform_2, window_bounds = array<i64: 1, 128>}, {pipeline_mode = #tpu.pipeline_mode<synchronous>, transform_indices = @transform_3, window_bounds = array<i64: 128, 128>}, {pipeline_mode = #tpu.pipeline_mode<synchronous>, transform_indices = @transform_4, window_bounds = array<i64: 1, 128>}, {transform_indices = @transform_5, window_bounds = array<i64: 16, 128>}]} {
    %c0_i32 = arith.constant 0 : i32
    %0 = arith.cmpi eq, %arg1, %c0_i32 : i32
    %1 = arith.extui %0 : i1 to i32
    %c0_i32_0 = arith.constant 0 : i32
    %2 = arith.cmpi ne, %1, %c0_i32_0 : i32
    scf.if %2 {
      %cst_18 = arith.constant 0.000000e+00 : f32
      %25 = vector.broadcast %cst_18 : f32 to vector<16x128xf32>
      %c0_19 = arith.constant 0 : index
      %c0_20 = arith.constant 0 : index
      %26 = vector.load %arg8[%c0_19, %c0_20] : memref<16x128xf32, #tpu.memory_space<vmem>>, vector<16x128xf32>
      tpu.vector_store %arg8[%c0_19, %c0_20], %25 {strides = array<i32>} : memref<16x128xf32, #tpu.memory_space<vmem>>, vector<16x128xf32>,
    } else {
    }
    %c0 = arith.constant 0 : index
    %c0_1 = arith.constant 0 : index
    %3 = vector.load %arg2[%c0, %c0_1] : memref<16x128xf32, #tpu.memory_space<vmem>>, vector<16x128xf32>
    %c0_2 = arith.constant 0 : index
    %c0_3 = arith.constant 0 : index
    %4 = vector.load %arg3[%c0_2, %c0_3] : memref<128x128xf32, #tpu.memory_space<vmem>>, vector<128x128xf32>
    %cst = arith.constant dense<0.000000e+00> : vector<16x128xf32>
    %5 = tpu.matmul %3, %4, %cst {dimension_numbers = #tpu.dot_dimension_numbers<[1], [0], [0], [1], [0, 0, 1, 1], [], []>} : vector<16x128xf32>, vector<128x128xf32>, vector<16x128xf32> -> vector<16x128xf32>
    %c0_4 = arith.constant 0 : index
    %c0_5 = arith.constant 0 : index
    %6 = vector.load %arg4[%c0_4, %c0_5] : memref<1x128xf32, #tpu.memory_space<vmem>>, vector<1x128xf32>
    %7 = vector.broadcast %6 : vector<1x128xf32> to vector<16x128xf32>
    %8 = arith.addf %5, %7 : vector<16x128xf32>
    %cst_6 = arith.constant 5.000000e-01 : f32
    %9 = vector.broadcast %cst_6 : f32 to vector<16x128xf32>
    %10 = arith.mulf %9, %8 : vector<16x128xf32>
    %cst_7 = arith.constant 0.707106769 : f32
    %11 = vector.broadcast %cst_7 : f32 to vector<16x128xf32>
    %12 = arith.mulf %8, %11 : vector<16x128xf32>
    %13 = math.erf %12 : vector<16x128xf32>
    %cst_8 = arith.constant 1.000000e+00 : f32
    %14 = vector.broadcast %cst_8 : f32 to vector<16x128xf32>
    %15 = arith.addf %14, %13 : vector<16x128xf32>
    %16 = arith.mulf %10, %15 : vector<16x128xf32>
    %c0_9 = arith.constant 0 : index
    %c0_10 = arith.constant 0 : index
    %17 = vector.load %arg8[%c0_9, %c0_10] : memref<16x128xf32, #tpu.memory_space<vmem>>, vector<16x128xf32>
    %c0_11 = arith.constant 0 : index
    %c0_12 = arith.constant 0 : index
    %18 = vector.load %arg5[%c0_11, %c0_12] : memref<128x128xf32, #tpu.memory_space<vmem>>, vector<128x128xf32>
    %cst_13 = arith.constant dense<0.000000e+00> : vector<16x128xf32>
    %19 = tpu.matmul %16, %18, %cst_13 {dimension_numbers = #tpu.dot_dimension_numbers<[1], [0], [0], [1], [0, 0, 1, 1], [], []>} : vector<16x128xf32>, vector<128x128xf32>, vector<16x128xf32> -> vector<16x128xf32>
    %20 = arith.addf %17, %19 : vector<16x128xf32>
    %c0_14 = arith.constant 0 : index
    %c0_15 = arith.constant 0 : index
    %21 = vector.load %arg8[%c0_14, %c0_15] : memref<16x128xf32, #tpu.memory_space<vmem>>, vector<16x128xf32>
    tpu.vector_store %arg8[%c0_14, %c0_15], %20 {strides = array<i32>} : memref<16x128xf32, #tpu.memory_space<vmem>>, vector<16x128xf32>,
    %c0_i32_16 = arith.constant 0 : i32
    %22 = arith.cmpi eq, %arg1, %c0_i32_16 : i32
    %23 = arith.extui %22 : i1 to i32
    %c0_i32_17 = arith.constant 0 : i32
    %24 = arith.cmpi ne, %23, %c0_i32_17 : i32
    scf.if %24 {
      %c0_18 = arith.constant 0 : index
      %c0_19 = arith.constant 0 : index
      %25 = vector.load %arg8[%c0_18, %c0_19] : memref<16x128xf32, #tpu.memory_space<vmem>>, vector<16x128xf32>
      %c0_20 = arith.constant 0 : index
      %c0_21 = arith.constant 0 : index
      %26 = vector.load %arg6[%c0_20, %c0_21] : memref<1x128xf32, #tpu.memory_space<vmem>>, vector<1x128xf32>
      %27 = vector.broadcast %26 : vector<1x128xf32> to vector<16x128xf32>
      %28 = arith.addf %25, %27 : vector<16x128xf32>
      %c0_22 = arith.constant 0 : index
      %c0_23 = arith.constant 0 : index
      %29 = vector.load %arg7[%c0_22, %c0_23] : memref<16x128xf32, #tpu.memory_space<vmem>>, vector<16x128xf32>
      tpu.vector_store %arg7[%c0_22, %c0_23], %28 {strides = array<i32>} : memref<16x128xf32, #tpu.memory_space<vmem>>, vector<16x128xf32>,
    } else {
    }
    return
  }
  func.func @transform_0(%arg0: i32, %arg1: i32) -> (i32, i32) {
    %c0_i32 = arith.constant 0 : i32
    %c0_i32_0 = arith.constant 0 : i32
    return %arg0, %c0_i32 : i32, i32
  }
  func.func @transform_1(%arg0: i32, %arg1: i32) -> (i32, i32) {
    %c0_i32 = arith.constant 0 : i32
    %c0_i32_0 = arith.constant 0 : i32
    return %c0_i32, %arg1 : i32, i32
  }
  func.func @transform_2(%arg0: i32, %arg1: i32) -> (i32, i32) {
    %c0_i32 = arith.constant 0 : i32
    %c0_i32_0 = arith.constant 0 : i32
    return %c0_i32, %arg1 : i32, i32
  }
  func.func @transform_3(%arg0: i32, %arg1: i32) -> (i32, i32) {
    %c0_i32 = arith.constant 0 : i32
    %c0_i32_0 = arith.constant 0 : i32
    return %arg1, %c0_i32 : i32, i32
  }
  func.func @transform_4(%arg0: i32, %arg1: i32) -> (i32, i32) {
    %c0_i32 = arith.constant 0 : i32
    %c0_i32_0 = arith.constant 0 : i32
    %c0_i32_1 = arith.constant 0 : i32
    return %c0_i32, %c0_i32_0 : i32, i32
  }
  func.func @transform_5(%arg0: i32, %arg1: i32) -> (i32, i32) {
    %c0_i32 = arith.constant 0 : i32
    %c0_i32_0 = arith.constant 0 : i32
    return %arg0, %c0_i32 : i32, i32
  }
}

</mosaic_0001>

<bundles_post_ra>
// kernel: tpu_custom_call.1
= control target key start
LH: loop header
LB: loop body
LE: loop exit
PB: predicated region body
PF: predicated region fallthrough
CT: control target
= control target key end

     0   :  { %10 = vsyncpa [#allocation4], 0  ;;  %s579_s0 = inlined_call_operand.hbm [shape: f32[16,128], index: 0, kind: input, shape index: {}]   ;;  %s580_s1 = inlined_call_operand.hbm [shape: f32[128,128], index: 1, kind: input, shape index: {}]   ;;  %s581_s2 = inlined_call_operand.vmem [shape: f32[1,128], index: 2, kind: input, shape index: {}]   ;;  %s582_s3 = inlined_call_operand.hbm [shape: f32[128,128], index: 3, kind: input, shape index: {}]   ;;  %s583_s4 = inlined_call_operand.vmem [shape: f32[1,128], index: 4, kind: input, shape index: {}]   ;;  %s584_s5 = inlined_call_operand.hbm [shape: f32[16,128], index: 5, kind: output, shape index: {}]  }
   0x1   :  { %11 = vsyncpa [#allocation7], 0 }
   0x2   :  { %12 = vsyncpa [#allocation5], 0  ;;  %s513_s18 = smov [#allocation6]   ;;  %s514_s20 = smov [#allocation3]  }
   0x3   :  { %s30_s19 = sshll.u32 %s513_s18, 4  ;;  %s18_s21 = sshll.u32 %s514_s20, 4  ;;  %s31_s19 = int_to_ptr.vmem [resolvable:$true] %s30_s19  ;;  %s19_s21 = int_to_ptr.vmem [resolvable:$true] %s18_s21 }
   0x4   :  { %s435_s22 = scalar_lea.vmem %s31_s19, 2048  ;;  %p440_p1 = scmp.lt.s32.totalorder %s31_s19, %s31_s19 }
   0x5   :  { %p436_p0 = scmp.ne.s32.totalorder %s31_s19, %s435_s22  ;;  %p441_p2 = scmp.lt.s32.totalorder %s435_s22, %s435_s22 }
   0x7   :  { %p442_p3 = por %p441_p2, %p440_p1 }
   0x9   :  { %p443_p4 = pnand %p442_p3, %p436_p0 }
   0xb   :  { %446 = shalt.err (!%p443_p4)
}
   0xc   :  { %s515_s23 = smov 128   ;;  %s516_s24 = smov 8  }
   0xd   :  { %36 = dma.hbm_to_vmem [thread:$0]  %s580_s1, 2048, %s31_s19, [#allocation7], %s515_s23, %s515_s23, %s516_s24  }
   0xe   :  { %s455_s27 = scalar_lea.vmem %s19_s21, 256  ;;  %p460_p6 = scmp.lt.s32.totalorder %s19_s21, %s19_s21 }
   0xf   :  { %p456_p5 = scmp.ne.s32.totalorder %s19_s21, %s455_s27  ;;  %p461_p7 = scmp.lt.s32.totalorder %s455_s27, %s455_s27 }
  0x11   :  { %p462_p8 = por %p461_p7, %p460_p6 }
  0x13   :  { %p463_p9 = pnand %p462_p8, %p456_p5 }
  0x15   :  { %466 = shalt.err (!%p463_p9)
}
  0x16   :  { %24 = dma.hbm_to_vmem [thread:$0]  %s579_s0, 256, %s19_s21, [#allocation4], %s515_s23, %s515_s23, %s516_s24  }
  0x17   :  { %s517_s30 = smov [#allocation8]  }
  0x18   :  { %s44_s6 = sshll.u32 %s517_s30, 4  ;;  %s45_s6 = int_to_ptr.vmem [resolvable:$true] %s44_s6 }
  0x19   :  { %s475_s7 = scalar_lea.vmem %s45_s6, 2048  ;;  %p480_p11 = scmp.lt.s32.totalorder %s45_s6, %s45_s6 }
  0x1a   :  { %p476_p10 = scmp.ne.s32.totalorder %s45_s6, %s475_s7  ;;  %p481_p12 = scmp.lt.s32.totalorder %s475_s7, %s475_s7 }
  0x1c   :  { %p482_p13 = por %p481_p12, %p480_p11 }
  0x1e   :  { %p483_p0 = pnand %p482_p13, %p476_p10 }
  0x20   :  { %486 = shalt.err (!%p483_p0)
}
  0x21   :  { %50 = dma.hbm_to_vmem [thread:$0]  %s582_s3, 2048, %s45_s6, [#allocation7], %s515_s23, %s515_s23, %s516_s24  }
  0x22   :  { %507 = dma.done.wait [#allocation4], 256  }
  0x23   :  { %508 = vsyncadd [#allocation4], 4294967040 }
  0x24   :  { %509 = dma.done.wait [#allocation7], 4096  }
  0x25   :  { %510 = vsyncadd [#allocation7], 4294963200  ;;  %v85_v0 = vld [vmem:[#allocation6 + $0x78] sm:$0xff]  ;;  %v84_v1 = vld [vmem:[#allocation6 + $0x70] sm:$0xff]  ;;  %s518_s10 = smov [#allocation9]  }
  0x26   :  { %347 = vmatprep.subr.mxu0 %v85_v0  ;;  %v83_v2 = vld [vmem:[#allocation6 + $0x68] sm:$0xff]  ;;  %v82_v3 = vld [vmem:[#allocation6 + $0x60] sm:$0xff]  ;;  %v68_v4 = vld [vmem:[#allocation3] sm:$0xff]  ;;  %s296_s11 = sshll.u32 %s518_s10, 4  ;;  %s297_s11 = int_to_ptr.vmem [resolvable:$true] %s296_s11 }
  0x27   :  { %348 = vmatpush3.msra.mxu0 %v85_v0  ;;  %v81_v5 = vld [vmem:[#allocation6 + $0x58] sm:$0xff]  ;;  %379 = vmatprep.mubr.f32.mxu0 %v68_v4  ;;  %v194_v7 = vld [vmem:[#allocation8 + $0x70] sm:$0xff]  ;;  %v193_v9 = vld [vmem:[#allocation8 + $0x68] sm:$0xff]  ;;  %s487_s12 = scalar_lea.vmem %s297_s11, 256  ;;  %p492_p2 = scmp.lt.s32.totalorder %s297_s11, %s297_s11 }
  0x28   :  { %349 = vmatprep.subr.mxu0 %v84_v1  ;;  %v195_v6 = vld [vmem:[#allocation8 + $0x78] sm:$0xff]  ;;  %v80_v8 = vld [vmem:[#allocation6 + $0x50] sm:$0xff]  ;;  %v79_v10 = vld [vmem:[#allocation6 + $0x48] sm:$0xff]  ;;  %p488_p1 = scmp.ne.s32.totalorder %s297_s11, %s487_s12  ;;  %p493_p3 = scmp.lt.s32.totalorder %s487_s12, %s487_s12 }
  0x29   :  { %350 = vmatpush3.msra.mxu0 %v84_v1  ;;  %382 = vmatprep.subr.mxu1 %v195_v6  ;;  %v78_v11 = vld [vmem:[#allocation6 + $0x40] sm:$0xff]  ;;  %v77_v12 = vld [vmem:[#allocation6 + $0x38] sm:$0xff]  ;;  %v76_v13 = vld [vmem:[#allocation6 + $0x30] sm:$0xff] }
  0x2a   :  { %351 = vmatprep.subr.mxu0 %v83_v2  ;;  %383 = vmatpush3.msra.mxu1 %v195_v6  ;;  %v75_v14 = vld [vmem:[#allocation6 + $0x28] sm:$0xff]  ;;  %v74_v15 = vld [vmem:[#allocation6 + $0x20] sm:$0xff]  ;;  %v73_v16 = vld [vmem:[#allocation6 + $0x18] sm:$0xff]  ;;  %p494_p4 = por %p493_p3, %p492_p2 }
  0x2b   :  { %352 = vmatpush3.msra.mxu0 %v83_v2  ;;  %384 = vmatprep.subr.mxu1 %v194_v7  ;;  %v72_v17 = vld [vmem:[#allocation6 + $0x10] sm:$0xff]  ;;  %v71_v18 = vld [vmem:[#allocation6 + $0x8] sm:$0xff]  ;;  %v70_v19 = vld [vmem:[#allocation6] sm:$0xff] }
  0x2c   :  { %353 = vmatprep.subr.mxu0 %v82_v3  ;;  %385 = vmatpush3.msra.mxu1 %v194_v7  ;;  %v69_v20 = vld [vmem:[#allocation3 + $0x8] sm:$0xff]  ;;  %v192_v21 = vld [vmem:[#allocation8 + $0x60] sm:$0xff]  ;;  %v190_v23 = vld [vmem:[#allocation8 + $0x50] sm:$0xff]  ;;  %p495_p5 = pnand %p494_p4, %p488_p1 }
  0x2d   :  { %354 = vmatpush3.msra.mxu0 %v82_v3  ;;  %386 = vmatprep.subr.mxu1 %v193_v9  ;;  %v191_v22 = vld [vmem:[#allocation8 + $0x58] sm:$0xff]  ;;  %v189_v24 = vld [vmem:[#allocation8 + $0x48] sm:$0xff]  ;;  %v188_v25 = vld [vmem:[#allocation8 + $0x40] sm:$0xff] }
  0x2e   :  { %355 = vmatprep.subr.mxu0 %v81_v5  ;;  %387 = vmatpush3.msra.mxu1 %v193_v9  ;;  %v187_v26 = vld [vmem:[#allocation8 + $0x38] sm:$0xff]  ;;  %v186_v27 = vld [vmem:[#allocation8 + $0x30] sm:$0xff]  ;;  %v185_v28 = vld [vmem:[#allocation8 + $0x28] sm:$0xff] }
  0x2f   :  { %356 = vmatpush3.msra.mxu0 %v81_v5  ;;  %388 = vmatprep.subr.mxu1 %v192_v21  ;;  %v184_v29 = vld [vmem:[#allocation8 + $0x20] sm:$0xff]  ;;  %v183_v30 = vld [vmem:[#allocation8 + $0x18] sm:$0xff]  ;;  %v182_v31 = vld [vmem:[#allocation8 + $0x10] sm:$0xff] }
  0x30   :  { %357 = vmatprep.subr.mxu0 %v80_v8  ;;  %389 = vmatpush3.msra.mxu1 %v192_v21  ;;  %v181_v32 = vld [vmem:[#allocation8 + $0x8] sm:$0xff]  ;;  %v180_v33 = vld [vmem:[#allocation8] sm:$0xff]  ;;  %v309_v34 = vld [vmem:[%s581_s2] ss:$0 sm:$0xff] }
  0x31   :  { %358 = vmatpush3.msra.mxu0 %v80_v8  ;;  %390 = vmatprep.subr.mxu1 %v191_v22  ;;  %v310_v49 = vld [vmem:[%s583_s4] ss:$0 sm:$0xff] }
  0x32   :  { %359 = vmatprep.subr.mxu0 %v79_v10  ;;  %391 = vmatpush3.msra.mxu1 %v191_v22 }
  0x33   :  { %360 = vmatpush3.msra.mxu0 %v79_v10  ;;  %392 = vmatprep.subr.mxu1 %v190_v23 }
  0x34   :  { %361 = vmatprep.subr.mxu0 %v78_v11  ;;  %393 = vmatpush3.msra.mxu1 %v190_v23 }
  0x35   :  { %362 = vmatpush3.msra.mxu0 %v78_v11  ;;  %394 = vmatprep.subr.mxu1 %v189_v24 }
  0x36   :  { %363 = vmatprep.subr.mxu0 %v77_v12  ;;  %395 = vmatpush3.msra.mxu1 %v189_v24 }
  0x37   :  { %364 = vmatpush3.msra.mxu0 %v77_v12  ;;  %396 = vmatprep.subr.mxu1 %v188_v25 }
  0x38   :  { %365 = vmatprep.subr.mxu0 %v76_v13  ;;  %397 = vmatpush3.msra.mxu1 %v188_v25 }
  0x39   :  { %366 = vmatpush3.msra.mxu0 %v76_v13  ;;  %398 = vmatprep.subr.mxu1 %v187_v26 }
  0x3a   :  { %367 = vmatprep.subr.mxu0 %v75_v14  ;;  %399 = vmatpush3.msra.mxu1 %v187_v26 }
  0x3b   :  { %368 = vmatpush3.msra.mxu0 %v75_v14  ;;  %400 = vmatprep.subr.mxu1 %v186_v27 }
  0x3c   :  { %369 = vmatprep.subr.mxu0 %v74_v15  ;;  %401 = vmatpush3.msra.mxu1 %v186_v27 }
  0x3d   :  { %370 = vmatpush3.msra.mxu0 %v74_v15  ;;  %402 = vmatprep.subr.mxu1 %v185_v28 }
  0x3e   :  { %371 = vmatprep.subr.mxu0 %v73_v16  ;;  %403 = vmatpush3.msra.mxu1 %v185_v28 }
  0x3f   :  { %372 = vmatpush3.msra.mxu0 %v73_v16  ;;  %404 = vmatprep.subr.mxu1 %v184_v29 }
  0x40   :  { %373 = vmatprep.subr.mxu0 %v72_v17  ;;  %405 = vmatpush3.msra.mxu1 %v184_v29 }
  0x41   :  { %374 = vmatpush3.msra.mxu0 %v72_v17  ;;  %406 = vmatprep.subr.mxu1 %v183_v30 }
  0x42   :  { %375 = vmatprep.subr.mxu0 %v71_v18  ;;  %407 = vmatpush3.msra.mxu1 %v183_v30 }
  0x43   :  { %376 = vmatpush3.msra.mxu0 %v71_v18  ;;  %408 = vmatprep.subr.mxu1 %v182_v31 }
  0x44   :  { %377 = vmatprep.subr.mxu0 %v70_v19  ;;  %409 = vmatpush3.msra.mxu1 %v182_v31 }
  0x45   :  { %378 = vmatpush3.msra.mxu0 %v70_v19  ;;  %410 = vmatprep.subr.mxu1 %v181_v32 }
  0x46   :  { %380 = vmatmul.mubr.f32.vlgmr.msra.gmra.mxu0 %v69_v20  ;;  %411 = vmatpush3.msra.mxu1 %v181_v32 }
  0x47   :  { %412 = vmatprep.subr.mxu1 %v180_v33 }
  0x48   :  { %413 = vmatpush3.msra.mxu1 %v180_v33 }
 0x106   :  { %v381_v35 = vpop.f32.mrf.mxu0 }
 0x107   :  { %v165_v36 = vadd.f32 %v381_v35, %v309_v34 }
 0x108   :  { %v159_v37 = vpop.f32.mrf.mxu0 }
 0x109   :  { %v171_v38 = vmul.f32 0.70710677, %v165_v36  ;;  %v160_v39 = vadd.f32 %v309_v34, %v159_v37  ;;  %v169_v46 = vmul.f32 0.5, %v165_v36 }
 0x10b   :  { %423 = verf.f32 %v171_v38  ;;  %v170_v40 = vmul.f32 0.70710677, %v160_v39  ;;  %v168_v44 = vmul.f32 0.5, %v160_v39 }
 0x10d   :  { %425 = verf.f32 %v170_v40 }
 0x118   :  { %v424_v41 = vpop.eup %423 }
 0x119   :  { %v175_v43 = vadd.f32 1.0, %v424_v41 }
 0x11a   :  { %v426_v42 = vpop.eup %425 }
 0x11b   :  { %v174_v45 = vadd.f32 1.0, %v426_v42  ;;  %v177_v48 = vmul.f32 %v175_v43, %v169_v46 }
 0x11d   :  { %v176_v47 = vmul.f32 %v174_v45, %v168_v44 }
 0x11f   :  { %414 = vmatprep.mubr.f32.mxu1 %v176_v47 }
 0x120   :  { %415 = vmatmul.mubr.f32.vlgmr.msra.gmra.mxu1 %v177_v48 }
 0x1e0   :  { %v416_v50 = vpop.f32.mrf.mxu1 }
 0x1e1   :  { %v288_v51 = vadd.f32 %v416_v50, %v310_v49 }
 0x1e2   :  { %v262_v52 = vpop.f32.mrf.mxu1 }
 0x1e3   :  { %290 = vst [vmem:[#allocation9 + $0x8] sm:$0xff] %v288_v51  ;;  %v287_v53 = vadd.f32 %v310_v49, %v262_v52 }
 0x1e5   :  { %289 = vst [vmem:[#allocation9] sm:$0xff] %v287_v53 }
 0x1e6   :  { %498 = shalt.err (!%p495_p5)
}
 0x1e7   :  { %302 = dma.vmem_to_hbm [thread:$0]  %s297_s11, 256, %s584_s5, [#allocation5], %s515_s23, %s515_s23, %s516_s24  }
 0x1e8   :  { %511 = dma.done.wait [#allocation5], 256  }
 0x1e9   :  { %512 = vsyncadd [#allocation5], 4294967040 }
 0x1ea   :  { %306 = vsyncpa [#allocation4], 1 }
 0x1eb   :  { %307 = vsyncpa [#allocation7], 1 }
 0x1ec   :  { %308 = vsyncpa [#allocation5], 1 }

</bundles_post_ra>
